<compile_context>
chip_gen: v6e
topology: v6e:2x2x1
jax: 0.10.0
libtpu: 0.0.40
codegen_flags: <defaults>
</compile_context>

<pallas_src>
import math
from functools import partial

import jax
import jax.numpy as jnp
from jax import lax
from jax.experimental import pallas as pl
from jax.experimental.pallas import tpu as pltpu

_LOG_2PI = math.log(2.0 * math.pi)


def _round_up(x, m):
    return ((x + m - 1) // m) * m


def _out_width(a_dim):
    # smallest sublane-friendly packed width holding [actions | value | log_prob]
    return _round_up(a_dim + 2, 8)


# ----------------------------------------------------------------------------
# Pallas kernel: one batch tile of the full actor-critic forward
# ----------------------------------------------------------------------------
def _actor_critic_kernel(
    obs_ref, eps_ref,
    w1_ref, b1_ref,
    wpivf_ref, bpivf_ref,
    whead_ref, bhead_ref,
    stdpad_ref,
    out_ref,
    *, logp_lane,
):
    # out lanes: [0:A]=actions, [A]=value, [A+1]=log_prob, rest 0.
    cd = w1_ref.dtype   # compute dtype of the MXU operands (f32 or bf16)

    obs = obs_ref[...]                                               # (TB, S)

    # shared trunk (accumulate + tanh in f32 on every chip generation)
    h = jnp.tanh(
        jnp.dot(obs, w1_ref[...], preferred_element_type=jnp.float32)
        + b1_ref[...]
    )                                                                # (TB, H) f32

    # fused policy + value branches: one lane-dense 2H-wide MXU pass
    lat = jnp.tanh(
        jnp.dot(h.astype(cd), wpivf_ref[...],
                preferred_element_type=jnp.float32)
        + bpivf_ref[...]
    )                                                                # (TB, 2H) f32

    # fused block-diag heads, pre-padded to the packed output width W:
    #   lanes [0:A] = action mean, lane A = value,
    #   lane A+1    = -(sum(log_std) + 0.5*A*log(2*pi))   (folded into bhead)
    head = (
        jnp.dot(lat.astype(cd), whead_ref[...],
                preferred_element_type=jnp.float32)
        + bhead_ref[...]
    )                                                                # (TB, W) f32

    # eps is pre-padded to W lanes (zeros in lanes >= A); stdpad holds
    # exp(log_std) in lanes < A and zeros elsewhere, so head + stdpad*eps
    # places the sampled actions with no sub-lane slicing and leaves the
    # value / log-prob lanes untouched.
    eps = eps_ref[...].astype(jnp.float32)                           # (TB, W)

    # (actions - mean) / std == eps exactly -> no subtract, no VPU divide.
    logp_term = -0.5 * jnp.sum(eps * eps, axis=-1, keepdims=True)    # (TB, 1)

    lane = lax.broadcasted_iota(jnp.int32, head.shape, 1)
    out_ref[...] = (head + stdpad_ref[...] * eps
                    + jnp.where(lane == logp_lane, logp_term, 0.0))


# ----------------------------------------------------------------------------
# Wrapper
# ----------------------------------------------------------------------------
@partial(jax.jit, static_argnames=("block_b",))
def actor_critic_forward(obs, eps, fused, block_b=None):
    """Returns (actions (B,A), values (B,1), log_prob (B,)).

    `fused` comes from fuse_params(); its weight dtype (f32 or bf16) selects
    the compute dtype fed to the MXU.
    """
    B, S = obs.shape
    A = eps.shape[1]
    W = fused["whead"].shape[1]
    assert A + 2 <= W, "packed output width too small for a_dim"
    cd = fused["w1"].dtype
    sub = 8 * (4 // jnp.dtype(cd).itemsize)     # sublane multiple: 8 (f32) / 16 (bf16)

    if block_b is None:
        # Big tiles amortize the ~0.35us per-grid-step overhead, but keep at
        # least 2 batch tiles when the batch allows so v7x's 2 TensorCores
        # both receive work.
        block_b = min(4096, max(sub, -(-B // 2)))
    TB = _round_up(block_b, sub)
    Bp = _round_up(B, TB)

    obs = obs.astype(cd)
    if Bp != B:
        obs = jnp.pad(obs, ((0, Bp - B), (0, 0)))
    # eps padded to the packed width W (zeros in lanes >= A and in padded rows)
    eps_p = jnp.zeros((Bp, W), cd).at[:B, :A].set(eps.astype(cd))

    grid = (Bp // TB,)

    def batched(cols):
        return pl.BlockSpec((TB, cols), lambda i: (i, 0))

    def resident(arr):  # constant block index -> stays VMEM-resident across grid
        return pl.BlockSpec(arr.shape, lambda i: (0, 0))

    weights = (
        fused["w1"], fused["b1"],
        fused["wpivf"], fused["bpivf"],
        fused["whead"], fused["bhead"],
        fused["stdpad"],
    )
    in_specs = [batched(S), batched(W)] + [resident(w) for w in weights]

    out = pl.pallas_call(
        partial(_actor_critic_kernel, logp_lane=A + 1),
        grid=grid,
        in_specs=in_specs,
        out_specs=pl.BlockSpec((TB, W), lambda i: (i, 0)),
        out_shape=jax.ShapeDtypeStruct((Bp, W), jnp.float32),
        compiler_params=pltpu.CompilerParams(
            dimension_semantics=("parallel",),   # 2 TCs on v7x split batch tiles
            vmem_limit_bytes=32 * 1024 * 1024,   # headroom for large TB (v5e default is 16 MiB)
        ),
    )(obs, eps_p, *weights)

    actions = out[:B, :A]
    values = out[:B, A:A + 1]
    log_prob = out[:B, A + 1]
    return actions, values, log_prob


# ----------------------------------------------------------------------------
# Parameter init (orthogonal, PPO-style init_weights) + fusion for the kernel
# ----------------------------------------------------------------------------
def _orthogonal(key, shape, gain):
    n_in, n_out = shape
    a = jax.random.normal(key, (max(n_in, n_out), min(n_in, n_out)), jnp.float32)
    q, r = jnp.linalg.qr(a)
    q = q * jnp.sign(jnp.diag(r))[None, :]
    if n_in < n_out:
        q = q.T
    return (gain * q[:n_in, :n_out]).astype(jnp.float32)


def init_params(key, s_dim, hidden, a_dim, log_std_init=0.0):
    ks = jax.random.split(key, 5)
    g_trunk = math.sqrt(2.0)   # actor_critic modules: gain = sqrt(2)
    g_act = 0.01               # action_net: gain = 0.01
    return {
        "w1":  _orthogonal(ks[0], (s_dim, hidden), g_trunk),
        "b1":  jnp.zeros((1, hidden), jnp.float32),
        "wpi": _orthogonal(ks[1], (hidden, hidden), g_trunk),
        "bpi": jnp.zeros((1, hidden), jnp.float32),
        "wvf": _orthogonal(ks[2], (hidden, hidden), g_trunk),
        "bvf": jnp.zeros((1, hidden), jnp.float32),
        "wv":  _orthogonal(ks[3], (hidden, 1), g_trunk),
        "bv":  jnp.zeros((1, 1), jnp.float32),
        "wa":  _orthogonal(ks[4], (hidden, a_dim), g_act),
        "ba":  jnp.zeros((1, a_dim), jnp.float32),
        "log_std": jnp.full((1, a_dim), log_std_init, jnp.float32),
    }


def fuse_params(p, dtype=jnp.float32):
    """One-time repack for the kernel:
       * lane-dense fused pi|vf weight,
       * block-diagonal head padded to the packed output width W,
       * -(sum(log_std) + 0.5*A*log(2*pi)) folded into the log-prob lane of bhead,
       * exp(log_std) precomputed into a W-wide `stdpad` (no per-tile EUP exp).
       dtype=jnp.bfloat16 halves input HBM traffic on v6e/v7x; keep f32 on v5e.
    """
    H = p["w1"].shape[1]
    A = p["wa"].shape[1]
    W = _out_width(A)

    whead = jnp.zeros((2 * H, W), jnp.float32)
    whead = whead.at[:H, :A].set(p["wa"]).at[H:, A].set(p["wv"][:, 0])

    c = jnp.sum(p["log_std"]) + 0.5 * A * _LOG_2PI
    bhead = jnp.zeros((1, W), jnp.float32)
    bhead = (bhead.at[0, :A].set(p["ba"][0])
                  .at[0, A].set(p["bv"][0, 0])
                  .at[0, A + 1].set(-c))

    stdpad = jnp.zeros((1, W), jnp.float32)
    stdpad = stdpad.at[0, :A].set(jnp.exp(p["log_std"][0]))

    return {
        "w1": p["w1"].astype(dtype),
        "b1": p["b1"],                                               # biases stay f32
        "wpivf": jnp.concatenate([p["wpi"], p["wvf"]], axis=1).astype(dtype),
        "bpivf": jnp.concatenate([p["bpi"], p["bvf"]], axis=1),
        "whead": whead.astype(dtype),
        "bhead": bhead,
        "stdpad": stdpad,
    }


# ----------------------------------------------------------------------------
# Pure-JAX reference (mirrors the PyTorch module math exactly)
# ----------------------------------------------------------------------------
def reference_forward(obs, eps, p):
    h = jnp.tanh(obs @ p["w1"] + p["b1"])
    latent_pi = jnp.tanh(h @ p["wpi"] + p["bpi"])
    latent_vf = jnp.tanh(h @ p["wvf"] + p["bvf"])
    values = latent_vf @ p["wv"] + p["bv"]
    mean = latent_pi @ p["wa"] + p["ba"]
    std = jnp.exp(p["log_std"])
    actions = mean + std * eps
    z = (actions - mean) / std
    logp = jnp.sum(-0.5 * z * z - p["log_std"] - 0.5 * _LOG_2PI, axis=-1)
    return actions, values, logp


if __name__ == "__main__":
    B, S, H, A = 8, 32, 64, 4   # batch, s_dim, hidden, a_dim

    key = jax.random.PRNGKey(0)
    k_obs, k_eps, k_par = jax.random.split(key, 3)

    obs = jax.random.normal(k_obs, (B, S), jnp.float32)
    eps = jax.random.normal(k_eps, (B, A), jnp.float32)
    params = init_params(k_par, S, H, A, log_std_init=0.0)
    fused = fuse_params(params)

    actions, values, log_prob = actor_critic_forward(obs, eps, fused)
    jax.block_until_ready((actions, values, log_prob))

    ra, rv, rl = reference_forward(obs, eps, params)
    assert actions.shape == (B, A) and values.shape == (B, 1) and log_prob.shape == (B,)
    assert jnp.allclose(actions, ra, atol=1e-4), "actions mismatch"
    assert jnp.allclose(values, rv, atol=1e-4), "values mismatch"
    assert jnp.allclose(log_prob, rl, atol=1e-4), "log_prob mismatch"

    # Exercise the multi-tile batch grid path (3 tiles of 8 rows, "parallel").
    B2 = 24
    k_o2, k_e2 = jax.random.split(jax.random.PRNGKey(1))
    obs2 = jax.random.normal(k_o2, (B2, S), jnp.float32)
    eps2 = jax.random.normal(k_e2, (B2, A), jnp.float32)
    a2, v2, l2 = actor_critic_forward(obs2, eps2, fused, block_b=8)
    jax.block_until_ready((a2, v2, l2))
    ra2, rv2, rl2 = reference_forward(obs2, eps2, params)
    assert jnp.allclose(a2, ra2, atol=1e-4), "grid actions mismatch"
    assert jnp.allclose(v2, rv2, atol=1e-4), "grid values mismatch"
    assert jnp.allclose(l2, rl2, atol=1e-4), "grid log_prob mismatch"

    # Optional bf16 input/weight path (halves HBM read traffic on v6e/v7x).
    fused_bf16 = fuse_params(params, dtype=jnp.bfloat16)
    B3 = 16
    k_o3, k_e3 = jax.random.split(jax.random.PRNGKey(2))
    obs3 = jax.random.normal(k_o3, (B3, S), jnp.float32)
    eps3 = jax.random.normal(k_e3, (B3, A), jnp.float32)
    a3, v3, l3 = actor_critic_forward(obs3, eps3, fused_bf16)
    jax.block_until_ready((a3, v3, l3))
    ra3, rv3, rl3 = reference_forward(obs3, eps3, params)
    assert jnp.allclose(a3, ra3, atol=2e-1, rtol=1e-1), "bf16 actions mismatch"
    assert jnp.allclose(v3, rv3, atol=2e-1, rtol=1e-1), "bf16 values mismatch"
    assert jnp.allclose(l3, rl3, atol=2e-1, rtol=1e-1), "bf16 log_prob mismatch"

    print("KERNEL_OK")
</pallas_src>

<mosaic_0001>
module attributes {stable_mosaic.version = 11 : i64} {
  func.func @_actor_critic_kernel(%arg0: i32, %arg1: memref<8x32xf32, #tpu.memory_space<vmem>>, %arg2: memref<8x8xf32, #tpu.memory_space<vmem>>, %arg3: memref<32x64xf32, #tpu.memory_space<vmem>>, %arg4: memref<1x64xf32, #tpu.memory_space<vmem>>, %arg5: memref<64x128xf32, #tpu.memory_space<vmem>>, %arg6: memref<1x128xf32, #tpu.memory_space<vmem>>, %arg7: memref<128x8xf32, #tpu.memory_space<vmem>>, %arg8: memref<1x8xf32, #tpu.memory_space<vmem>>, %arg9: memref<1x8xf32, #tpu.memory_space<vmem>>, %arg10: memref<8x8xf32, #tpu.memory_space<vmem>>) attributes {dimension_semantics = [#tpu.dimension_semantics<parallel>], iteration_bounds = array<i64: 1>, scalar_prefetch = 0 : i64, scratch_operands = 0 : i64, tpu.core_type = #tpu.core_type<tc>, window_params = [{transform_indices = @transform_0, window_bounds = array<i64: 8, 32>}, {transform_indices = @transform_1, window_bounds = array<i64: 8, 8>}, {pipeline_mode = #tpu.pipeline_mode<synchronous>, transform_indices = @transform_2, window_bounds = array<i64: 32, 64>}, {pipeline_mode = #tpu.pipeline_mode<synchronous>, transform_indices = @transform_3, window_bounds = array<i64: 1, 64>}, {pipeline_mode = #tpu.pipeline_mode<synchronous>, transform_indices = @transform_4, window_bounds = array<i64: 64, 128>}, {pipeline_mode = #tpu.pipeline_mode<synchronous>, transform_indices = @transform_5, window_bounds = array<i64: 1, 128>}, {pipeline_mode = #tpu.pipeline_mode<synchronous>, transform_indices = @transform_6, window_bounds = array<i64: 128, 8>}, {pipeline_mode = #tpu.pipeline_mode<synchronous>, transform_indices = @transform_7, window_bounds = array<i64: 1, 8>}, {pipeline_mode = #tpu.pipeline_mode<synchronous>, transform_indices = @transform_8, window_bounds = array<i64: 1, 8>}, {transform_indices = @transform_9, window_bounds = array<i64: 8, 8>}]} {
    %c0 = arith.constant 0 : index
    %c0_0 = arith.constant 0 : index
    %0 = vector.load %arg1[%c0, %c0_0] : memref<8x32xf32, #tpu.memory_space<vmem>>, vector<8x32xf32>
    %c0_1 = arith.constant 0 : index
    %c0_2 = arith.constant 0 : index
    %1 = vector.load %arg3[%c0_1, %c0_2] : memref<32x64xf32, #tpu.memory_space<vmem>>, vector<32x64xf32>
    %cst = arith.constant dense<0.000000e+00> : vector<8x64xf32>
    %2 = tpu.matmul %0, %1, %cst {dimension_numbers = #tpu.dot_dimension_numbers<[1], [0], [0], [1], [0, 0, 1, 1], [], []>} : vector<8x32xf32>, vector<32x64xf32>, vector<8x64xf32> -> vector<8x64xf32>
    %c0_3 = arith.constant 0 : index
    %c0_4 = arith.constant 0 : index
    %3 = vector.load %arg4[%c0_3, %c0_4] : memref<1x64xf32, #tpu.memory_space<vmem>>, vector<1x64xf32>
    %4 = vector.broadcast %3 : vector<1x64xf32> to vector<8x64xf32>
    %5 = arith.addf %2, %4 : vector<8x64xf32>
    %6 = math.tanh %5 : vector<8x64xf32>
    %c0_5 = arith.constant 0 : index
    %c0_6 = arith.constant 0 : index
    %7 = vector.load %arg5[%c0_5, %c0_6] : memref<64x128xf32, #tpu.memory_space<vmem>>, vector<64x128xf32>
    %cst_7 = arith.constant dense<0.000000e+00> : vector<8x128xf32>
    %8 = tpu.matmul %6, %7, %cst_7 {dimension_numbers = #tpu.dot_dimension_numbers<[1], [0], [0], [1], [0, 0, 1, 1], [], []>} : vector<8x64xf32>, vector<64x128xf32>, vector<8x128xf32> -> vector<8x128xf32>
    %c0_8 = arith.constant 0 : index
    %c0_9 = arith.constant 0 : index
    %9 = vector.load %arg6[%c0_8, %c0_9] : memref<1x128xf32, #tpu.memory_space<vmem>>, vector<1x128xf32>
    %10 = vector.broadcast %9 : vector<1x128xf32> to vector<8x128xf32>
    %11 = arith.addf %8, %10 : vector<8x128xf32>
    %12 = math.tanh %11 : vector<8x128xf32>
    %c0_10 = arith.constant 0 : index
    %c0_11 = arith.constant 0 : index
    %13 = vector.load %arg7[%c0_10, %c0_11] : memref<128x8xf32, #tpu.memory_space<vmem>>, vector<128x8xf32>
    %cst_12 = arith.constant dense<0.000000e+00> : vector<8x8xf32>
    %14 = tpu.matmul %12, %13, %cst_12 {dimension_numbers = #tpu.dot_dimension_numbers<[1], [0], [0], [1], [0, 0, 1, 1], [], []>} : vector<8x128xf32>, vector<128x8xf32>, vector<8x8xf32> -> vector<8x8xf32>
    %c0_13 = arith.constant 0 : index
    %c0_14 = arith.constant 0 : index
    %15 = vector.load %arg8[%c0_13, %c0_14] : memref<1x8xf32, #tpu.memory_space<vmem>>, vector<1x8xf32>
    %16 = vector.broadcast %15 : vector<1x8xf32> to vector<8x8xf32>
    %17 = arith.addf %14, %16 : vector<8x8xf32>
    %c0_15 = arith.constant 0 : index
    %c0_16 = arith.constant 0 : index
    %18 = vector.load %arg2[%c0_15, %c0_16] : memref<8x8xf32, #tpu.memory_space<vmem>>, vector<8x8xf32>
    %19 = arith.mulf %18, %18 : vector<8x8xf32>
    %cst_17 = arith.constant dense<0.000000e+00> : vector<8xf32>
    %20 = vector.multi_reduction <add>, %19, %cst_17 [1] : vector<8x8xf32> to vector<8xf32>
    %21 = vector.shape_cast %20 : vector<8xf32> to vector<8x1xf32>
    %cst_18 = arith.constant -5.000000e-01 : f32
    %22 = vector.broadcast %cst_18 : f32 to vector<8x1xf32>
    %23 = arith.mulf %22, %21 : vector<8x1xf32>
    %24 = tpu.iota {dimensions = array<i32: 1>} : vector<8x8xi32>
    %c0_19 = arith.constant 0 : index
    %c0_20 = arith.constant 0 : index
    %25 = vector.load %arg9[%c0_19, %c0_20] : memref<1x8xf32, #tpu.memory_space<vmem>>, vector<1x8xf32>
    %26 = vector.broadcast %25 : vector<1x8xf32> to vector<8x8xf32>
    %27 = arith.mulf %26, %18 : vector<8x8xf32>
    %28 = arith.addf %17, %27 : vector<8x8xf32>
    %c5_i32 = arith.constant 5 : i32
    %29 = vector.broadcast %c5_i32 : i32 to vector<8x8xi32>
    %30 = arith.cmpi eq, %24, %29 : vector<8x8xi32>
    %cst_21 = arith.constant 0.000000e+00 : f32
    %31 = vector.shape_cast %23 : vector<8x1xf32> to vector<8x1xf32>
    %32 = vector.broadcast %31 : vector<8x1xf32> to vector<8x8xf32>
    %33 = vector.broadcast %cst_21 : f32 to vector<8x8xf32>
    %34 = arith.select %30, %32, %33 : vector<8x8xi1>, vector<8x8xf32>
    %35 = arith.addf %28, %34 : vector<8x8xf32>
    %c0_22 = arith.constant 0 : index
    %c0_23 = arith.constant 0 : index
    %36 = vector.load %arg10[%c0_22, %c0_23] : memref<8x8xf32, #tpu.memory_space<vmem>>, vector<8x8xf32>
    tpu.vector_store %arg10[%c0_22, %c0_23], %35 {strides = array<i32>} : memref<8x8xf32, #tpu.memory_space<vmem>>, vector<8x8xf32>,
    return
  }
  func.func @transform_0(%arg0: i32) -> (i32, i32) {
    %c0_i32 = arith.constant 0 : i32
    %c0_i32_0 = arith.constant 0 : i32
    return %arg0, %c0_i32 : i32, i32
  }
  func.func @transform_1(%arg0: i32) -> (i32, i32) {
    %c0_i32 = arith.constant 0 : i32
    %c0_i32_0 = arith.constant 0 : i32
    return %arg0, %c0_i32 : i32, i32
  }
  func.func @transform_2(%arg0: i32) -> (i32, i32) {
    %c0_i32 = arith.constant 0 : i32
    %c0_i32_0 = arith.constant 0 : i32
    %c0_i32_1 = arith.constant 0 : i32
    return %c0_i32, %c0_i32_0 : i32, i32
  }
  func.func @transform_3(%arg0: i32) -> (i32, i32) {
    %c0_i32 = arith.constant 0 : i32
    %c0_i32_0 = arith.constant 0 : i32
    %c0_i32_1 = arith.constant 0 : i32
    return %c0_i32, %c0_i32_0 : i32, i32
  }
  func.func @transform_4(%arg0: i32) -> (i32, i32) {
    %c0_i32 = arith.constant 0 : i32
    %c0_i32_0 = arith.constant 0 : i32
    %c0_i32_1 = arith.constant 0 : i32
    return %c0_i32, %c0_i32_0 : i32, i32
  }
  func.func @transform_5(%arg0: i32) -> (i32, i32) {
    %c0_i32 = arith.constant 0 : i32
    %c0_i32_0 = arith.constant 0 : i32
    %c0_i32_1 = arith.constant 0 : i32
    return %c0_i32, %c0_i32_0 : i32, i32
  }
  func.func @transform_6(%arg0: i32) -> (i32, i32) {
    %c0_i32 = arith.constant 0 : i32
    %c0_i32_0 = arith.constant 0 : i32
    %c0_i32_1 = arith.constant 0 : i32
    return %c0_i32, %c0_i32_0 : i32, i32
  }
  func.func @transform_7(%arg0: i32) -> (i32, i32) {
    %c0_i32 = arith.constant 0 : i32
    %c0_i32_0 = arith.constant 0 : i32
    %c0_i32_1 = arith.constant 0 : i32
    return %c0_i32, %c0_i32_0 : i32, i32
  }
  func.func @transform_8(%arg0: i32) -> (i32, i32) {
    %c0_i32 = arith.constant 0 : i32
    %c0_i32_0 = arith.constant 0 : i32
    %c0_i32_1 = arith.constant 0 : i32
    return %c0_i32, %c0_i32_0 : i32, i32
  }
  func.func @transform_9(%arg0: i32) -> (i32, i32) {
    %c0_i32 = arith.constant 0 : i32
    %c0_i32_0 = arith.constant 0 : i32
    return %arg0, %c0_i32 : i32, i32
  }
}

</mosaic_0001>

<bundles_post_ra>
// kernel: actor_critic_forward.1
= control target key start
LH: loop header
LB: loop body
LE: loop exit
PB: predicated region body
PF: predicated region fallthrough
CT: control target
= control target key end

     0   :  { %v436_v0 = vmov 0.0   ;;  %vm437_vm0 = vmmov 0   ;;  %vm44_vm1 = vcmask 261120   ;;  %vm134_vm2 = vcmask 523264   ;;  %s629_s2 = inlined_call_operand.vmem [shape: f32[32,64], index: 2, kind: input, shape index: {}]   ;;  %s630_s0 = inlined_call_operand.vmem [shape: f32[8,32], index: 0, kind: input, shape index: {}]   ;;  %s631_s4 = inlined_call_operand.vmem [shape: f32[64,128], index: 4, kind: input, shape index: {}]   ;;  %s632_s6 = inlined_call_operand.vmem [shape: f32[128,8], index: 6, kind: input, shape index: {}]   ;;  %s633_s3 = inlined_call_operand.vmem [shape: f32[1,64], index: 3, kind: input, shape index: {}]   ;;  %s634_s1 = inlined_call_operand.vmem [shape: f32[8,8], index: 1, kind: input, shape index: {}]   ;;  %s635_s5 = inlined_call_operand.vmem [shape: f32[1,128], index: 5, kind: input, shape index: {}]   ;;  %s636_s8 = inlined_call_operand.vmem [shape: f32[1,8], index: 8, kind: input, shape index: {}]   ;;  %s637_s7 = inlined_call_operand.vmem [shape: f32[1,8], index: 7, kind: input, shape index: {}]   ;;  %s638_s9 = inlined_call_operand.vmem [shape: f32[8,8], index: 9, kind: output, shape index: {}]  }
   0x1   :  { %365 = vmatprep.subr.mxu1 %v436_v0  ;;  %v36_v1 = vld [vmem:[%s629_s2 + $0x18] sm:$0xff]  ;;  %v35_v2 = vld [vmem:[%s629_s2 + $0x10] sm:$0xff]  ;;  %373 = vmatprep.mubr.msk.f32.mxu1 %vm437_vm0, %v436_v0  ;;  %v34_v3 = vld [vmem:[%s629_s2 + $0x8] sm:$0xff]  ;;  %vm304_vm3 = vcmask 64512   ;;  %v309_v43 = vlaneseq }
   0x2   :  { %366 = vmatpush3.msra.mxu1 %v36_v1  ;;  %395 = vmatprep.subr.mxu0 %v436_v0  ;;  %v33_v4 = vld [vmem:[%s629_s2] sm:$0xff]  ;;  %v126_v6 = vld [vmem:[%s631_s4 + $0x38] sm:$0xff]  ;;  %v125_v7 = vld [vmem:[%s631_s4 + $0x30] sm:$0xff] }
   0x3   :  { %367 = vmatprep.subr.mxu1 %v436_v0  ;;  %427 = vmatprep.mubr.msk.f32.mxu0 %vm437_vm0, %v436_v0  ;;  %v32_v5 = vld [vmem:[%s630_s0] sm:$0xff]  ;;  %v124_v8 = vld [vmem:[%s631_s4 + $0x28] sm:$0xff]  ;;  %v122_v10 = vld [vmem:[%s631_s4 + $0x18] sm:$0xff]  ;;  %v310_v45 = vand.u32 127, %v309_v43 }
   0x4   :  { %368 = vmatpush3.msra.mxu1 %v35_v2  ;;  %v123_v9 = vld [vmem:[%s631_s4 + $0x20] sm:$0xff]  ;;  %v121_v11 = vld [vmem:[%s631_s4 + $0x10] sm:$0xff]  ;;  %v120_v12 = vld [vmem:[%s631_s4 + $0x8] sm:$0xff] }
   0x5   :  { %369 = vmatprep.subr.mxu1 %v436_v0  ;;  %v119_v13 = vld [vmem:[%s631_s4] sm:$0xff]  ;;  %v224_v14 = vld [vmem:[%s632_s6 + $0x78] sm:$0xff]  ;;  %v223_v15 = vld [vmem:[%s632_s6 + $0x70] sm:$0xff]  ;;  %vm320_vm4 = vcmp.eq.s32.totalorder %v310_v45, 5 }
   0x6   :  { %370 = vmatpush3.msra.mxu1 %v34_v3  ;;  %396 = vmatpush3.msra.mxu0 %v224_v14  ;;  %v222_v16 = vld [vmem:[%s632_s6 + $0x68] sm:$0xff]  ;;  %v221_v17 = vld [vmem:[%s632_s6 + $0x60] sm:$0xff]  ;;  %v220_v18 = vld [vmem:[%s632_s6 + $0x58] sm:$0xff] }
   0x7   :  { %371 = vmatprep.subr.mxu1 %v436_v0  ;;  %397 = vmatprep.subr.mxu0 %v436_v0  ;;  %v219_v19 = vld [vmem:[%s632_s6 + $0x50] sm:$0xff]  ;;  %v218_v20 = vld [vmem:[%s632_s6 + $0x48] sm:$0xff]  ;;  %v328_v21 = vld [vmem:[%s633_s3] ss:$0 sm:$0xff] }
   0x8   :  { %372 = vmatpush3.msra.mxu1 %v33_v4  ;;  %398 = vmatpush3.msra.mxu0 %v223_v15  ;;  %v217_v26 = vld [vmem:[%s632_s6 + $0x40] sm:$0xff]  ;;  %v216_v27 = vld [vmem:[%s632_s6 + $0x38] sm:$0xff]  ;;  %v215_v28 = vld [vmem:[%s632_s6 + $0x30] sm:$0xff] }
   0x9   :  { %374 = vmatmul.mubr.msk.f32.vlgmr.msra.gmra.mxu1 %vm44_vm1, %v32_v5  ;;  %376 = vmatprep.subr.mxu1 %v436_v0  ;;  %v214_v29 = vld [vmem:[%s632_s6 + $0x28] sm:$0xff]  ;;  %v213_v30 = vld [vmem:[%s632_s6 + $0x20] sm:$0xff]  ;;  %v212_v31 = vld [vmem:[%s632_s6 + $0x18] sm:$0xff] }
   0xa   :  { %392 = vmatprep.mubr.msk.f32.mxu1 %vm437_vm0, %v436_v0  ;;  %377 = vmatpush3.msra.mxu1 %v126_v6  ;;  %v211_v32 = vld [vmem:[%s632_s6 + $0x10] sm:$0xff]  ;;  %v210_v33 = vld [vmem:[%s632_s6 + $0x8] sm:$0xff]  ;;  %v209_v34 = vld [vmem:[%s632_s6] sm:$0xff] }
   0xb   :  { %378 = vmatprep.subr.mxu1 %v436_v0  ;;  %399 = vmatprep.subr.mxu0 %v436_v0  ;;  %v302_v35 = vld [vmem:[%s634_s1] sm:$0xff] }
   0xc   :  { %379 = vmatpush3.msra.mxu1 %v125_v7  ;;  %400 = vmatpush3.msra.mxu0 %v222_v16  ;;  %v303_v36 = vmul.f32 %v302_v35, %v302_v35  ;;  %v330_v38 = vld [vmem:[%s635_s5] ss:$0 sm:$0xff] }
   0xd   :  { %380 = vmatprep.subr.mxu1 %v436_v0  ;;  %401 = vmatprep.subr.mxu0 %v436_v0  ;;  %v333_v46 = vld [vmem:[%s636_s8] ss:$0 sm:$0xff] }
   0xe   :  { %381 = vmatpush3.msra.mxu1 %v124_v8  ;;  %402 = vmatpush3.msra.mxu0 %v221_v17  ;;  %v305_v37 = vsel %vm304_vm3, %v303_v36, 0.0  ;;  %v332_v47 = vld [vmem:[%s637_s7] ss:$0 sm:$0xff]  ;;  %v318_v49 = vmul.f32 %v333_v46, %v302_v35 }
   0xf   :  { %382 = vmatprep.subr.mxu1 %v436_v0  ;;  %403 = vmatprep.subr.mxu0 %v436_v0 }
  0x10   :  { %383 = vmatpush3.msra.mxu1 %v123_v9  ;;  %404 = vmatpush3.msra.mxu0 %v220_v18 }
  0x11   :  { %384 = vmatprep.subr.mxu1 %v436_v0  ;;  %405 = vmatprep.subr.mxu0 %v436_v0 }
  0x12   :  { %385 = vmatpush3.msra.mxu1 %v122_v10  ;;  %406 = vmatpush3.msra.mxu0 %v219_v19 }
  0x13   :  { %386 = vmatprep.subr.mxu1 %v436_v0  ;;  %407 = vmatprep.subr.mxu0 %v436_v0 }
  0x14   :  { %387 = vmatpush3.msra.mxu1 %v121_v11  ;;  %408 = vmatpush3.msra.mxu0 %v218_v20 }
  0x15   :  { %388 = vmatprep.subr.mxu1 %v436_v0  ;;  %409 = vmatprep.subr.mxu0 %v436_v0 }
  0x16   :  { %389 = vmatpush3.msra.mxu1 %v120_v12  ;;  %410 = vmatpush3.msra.mxu0 %v217_v26 }
  0x17   :  { %390 = vmatprep.subr.mxu1 %v436_v0  ;;  %411 = vmatprep.subr.mxu0 %v436_v0 }
  0x18   :  { %391 = vmatpush3.msra.mxu1 %v119_v13  ;;  %412 = vmatpush3.msra.mxu0 %v216_v27 }
  0x19   :  { %413 = vmatprep.subr.mxu0 %v436_v0  ;;  %306 = vadd.xlane.f32.xlu0 %v305_v37 }
  0x1a   :  { %414 = vmatpush3.msra.mxu0 %v215_v28 }
  0x1b   :  { %415 = vmatprep.subr.mxu0 %v436_v0 }
  0x1c   :  { %416 = vmatpush3.msra.mxu0 %v214_v29 }
  0x1d   :  { %417 = vmatprep.subr.mxu0 %v436_v0 }
  0x1e   :  { %418 = vmatpush3.msra.mxu0 %v213_v30 }
  0x1f   :  { %419 = vmatprep.subr.mxu0 %v436_v0 }
  0x20   :  { %420 = vmatpush3.msra.mxu0 %v212_v31 }
  0x21   :  { %421 = vmatprep.subr.mxu0 %v436_v0 }
  0x22   :  { %422 = vmatpush3.msra.mxu0 %v211_v32 }
  0x23   :  { %423 = vmatprep.subr.mxu0 %v436_v0 }
  0x24   :  { %424 = vmatpush3.msra.mxu0 %v210_v33 }
  0x25   :  { %425 = vmatprep.subr.mxu0 %v436_v0 }
  0x26   :  { %426 = vmatpush3.msra.mxu0 %v209_v34 }
  0xa2   :  { %v307_v44 = vpop.xlane.xlu0 %306 }
  0xa3   :  { %v308_v48 = vmul.f32 -0.5, %v307_v44 }
  0xa5   :  { %v321_v52 = vsel %vm320_vm4, %v308_v48, 0.0 }
  0xc9   :  { %v114_v22 = vpop.f32.mrf.mxu1 }
  0xca   :  { %v115_v23 = vadd.f32 %v328_v21, %v114_v22 }
  0xcb   :  { %v375_v24 = vpop.f32.mrf.mxu1 }
  0xcc   :  { %432 = vtanh.f32 %v115_v23 }
  0xd9   :  { %v433_v25 = vpop.eup %432 }
  0xda   :  { %393 = vmatmul.mubr.msk.f32.vlgmr.msra.gmra.mxu1 %vm134_vm2, %v433_v25 }
 0x19a   :  { %v204_v39 = vpop.f32.mrf.mxu1 }
 0x19b   :  { %v205_v40 = vadd.f32 %v330_v38, %v204_v39 }
 0x19c   :  { %v394_v41 = vpop.f32.mrf.mxu1 }
 0x19d   :  { %434 = vtanh.f32 %v205_v40 }
 0x1aa   :  { %v435_v42 = vpop.eup %434 }
 0x1ab   :  { %428 = vmatmul.mubr.f32.vlgmr.msra.gmra.mxu0 %v435_v42 }
 0x26b   :  { %v298_v50 = vpop.f32.mrf.mxu0 }
 0x26c   :  { %v299_v51 = vadd.f32 %v332_v47, %v298_v50 }
 0x26d   :  { %v429_v53 = vpop.f32.mrf.mxu0 }
 0x26e   :  { %v319_v54 = vadd.f32 %v318_v49, %v299_v51 }
 0x270   :  { %v322_v55 = vadd.f32 %v321_v52, %v319_v54 }
 0x272   :  { %323 = vst.msk [vmem:[%s638_s9] sm:$0xff] %vm304_vm3, %v322_v55 }

</bundles_post_ra>
